<compile_context>
chip_gen: v7x
topology: tpu7x:2x2x1
jax: 0.10.0
libtpu: 0.0.40
codegen_flags: <defaults>
</compile_context>

<pallas_src>
import functools
import math

import jax
import jax.numpy as jnp
import numpy as np
from jax.experimental import pallas as pl
from jax.experimental.pallas import tpu as pltpu


def _round_up(a: int, b: int) -> int:
    return (a + b - 1) // b * b


def _rfft_kernel(x_ref, bh_ref, bl_ref, out_ref):
    # x_ref:  (TM, N)  f32 input rows
    # bh_ref: (N, TN)  bf16 high half of the fused [cos | -sin] basis
    # bl_ref: (N, TN)  bf16 low  half of the fused [cos | -sin] basis
    # out_ref:(TM, TN) f32 packed [re | im] columns (lane-dense)
    #
    # bf16x3: out ~= xh@bh + xl@bh + xh@bl   (f32 accumulation on the MXU).
    x = x_ref[...]
    xh = x.astype(jnp.bfloat16)
    xl = (x - xh.astype(jnp.float32)).astype(jnp.bfloat16)
    bh = bh_ref[...]
    bl = bl_ref[...]
    acc = jnp.dot(xh, bh, preferred_element_type=jnp.float32)
    acc = acc + jnp.dot(xl, bh, preferred_element_type=jnp.float32)
    acc = acc + jnp.dot(xh, bl, preferred_element_type=jnp.float32)
    out_ref[...] = acc


@functools.lru_cache(maxsize=16)
def _dft_basis_hi_lo(N: int, F: int, W: int):
    """Fused [cos | -sin] DFT basis, bf16 hi/lo split, built on device once."""
    n = jnp.arange(N, dtype=jnp.int32)[:, None]        # (N, 1)
    k = jnp.arange(F, dtype=jnp.int32)[None, :]        # (1, F)
    phase = (n * k) % N                                 # exact, in [0, N)
    ang = phase.astype(jnp.float32) * jnp.float32(2.0 * math.pi / N)
    basis = jnp.concatenate([jnp.cos(ang), -jnp.sin(ang)], axis=1)  # (N, 2F)
    if W > 2 * F:
        basis = jnp.pad(basis, ((0, 0), (0, W - 2 * F)))            # (N, W)
    basis_hi = basis.astype(jnp.bfloat16)
    basis_lo = (basis - basis_hi.astype(jnp.float32)).astype(jnp.bfloat16)
    return (jax.block_until_ready(basis_hi), jax.block_until_ready(basis_lo))


def _select_tiling(M, N, W, budget, tile_m=None, max_tn=None):
    """Pick (tile_m, tile_n, basis_buffer_count) fitting the VMEM budget."""

    def working_set(tm, tn, bbufs):
        x_bytes = 2 * tm * N * 4                  # f32 row tile, double buffered
        basis_bytes = bbufs * 2 * (N * tn * 2)    # hi + lo bf16 basis tiles
        out_bytes = 2 * tm * tn * 4               # f32 out tile, double buffered
        scratch = tm * N * 4 + tm * tn * 4        # in-kernel xh/xl + accumulator
        return x_bytes + basis_bytes + out_bytes + scratch

    if tile_m is not None:
        tm_candidates = (tile_m,)
    elif M >= 256:
        tm_candidates = (256, 128)                # bigger LHS tiles on v6e/v7x MXU
    else:
        tm_candidates = (128,)

    # Regime A: whole basis resident in VMEM, single buffered (constant index).
    if max_tn is None or max_tn >= W:
        for tm in tm_candidates:
            if working_set(tm, W, 1) <= budget:
                return tm, W, 1

    # Regime B: stream the basis in lane-dense column tiles (double buffered).
    tm = tm_candidates[-1]
    tn_cap = W if max_tn is None else min(W, _round_up(max_tn, 128))
    for tn in range(tn_cap, 127, -128):
        if working_set(tm, tn, 2) <= budget:
            return tm, tn, 2
    # TODO(synk): add a K-axis + VMEM accumulator if even tn=128 cannot fit.
    return tm, 128, 2


def fourier_decomp_rfft(x: jax.Array, *, tile_m: int | None = None,
                        max_tn: int | None = None) -> jax.Array:
    """Pallas implementation of torch.fft.rfft(x, dim=-1) (complex64 output)."""
    orig_shape = x.shape
    N = int(orig_shape[-1])
    F = N // 2 + 1
    M = int(math.prod(orig_shape[:-1])) if len(orig_shape) > 1 else 1

    # Generation-aware VMEM budget (~85% of physical, conservatively capped).
    try:
        vmem_cap = int(pltpu.get_tpu_info().vmem_capacity_bytes)
    except Exception:
        vmem_cap = 64 * 1024 * 1024               # safe on every generation
    vmem_limit = min(int(vmem_cap * 0.85), 100 * 1024 * 1024)
    budget = vmem_limit - 4 * 1024 * 1024         # headroom for compiler scratch

    W = _round_up(2 * F, 128)                     # tight [re | im] packing
    tm, tn, basis_bufs = _select_tiling(M, N, W, budget, tile_m, max_tn)
    W = _round_up(W, tn)                          # W divisible by the column tile
    grid_m = pl.cdiv(M, tm)
    grid_c = W // tn
    M_pad = grid_m * tm

    x2d = x.reshape(M, N).astype(jnp.float32)
    if M_pad != M:                                # zero rows -> zero spectra
        x2d = jnp.pad(x2d, ((0, M_pad - M), (0, 0)))

    basis_hi, basis_lo = _dft_basis_hi_lo(N, F, W)

    # Grid order: larger operand's axis outermost so it isn't re-DMA'd every
    # inner step.  Both axes are independent -> fully "parallel" (v7x megacore).
    basis_total = N * W * 4
    x_total = M_pad * N * 4
    if basis_total >= x_total:
        grid = (grid_c, grid_m)
        x_map = lambda c, r: (r, 0)
        b_map = lambda c, r: (0, c)
        o_map = lambda c, r: (r, c)
    else:
        grid = (grid_m, grid_c)
        x_map = lambda r, c: (r, 0)
        b_map = lambda r, c: (0, c)
        o_map = lambda r, c: (r, c)

    # Constant basis block -> single buffer; streamed basis -> default double.
    basis_kwargs = {"pipeline_mode": pl.Buffered(1)} if basis_bufs == 1 else {}
    basis_spec_hi = pl.BlockSpec((N, tn), b_map, **basis_kwargs)
    basis_spec_lo = pl.BlockSpec((N, tn), b_map, **basis_kwargs)

    out = pl.pallas_call(
        _rfft_kernel,
        out_shape=jax.ShapeDtypeStruct((M_pad, W), jnp.float32),
        grid_spec=pl.GridSpec(
            grid=grid,
            in_specs=[
                pl.BlockSpec((tm, N), x_map),     # x row tile
                basis_spec_hi,                    # basis hi column tile
                basis_spec_lo,                    # basis lo column tile
            ],
            out_specs=pl.BlockSpec((tm, tn), o_map),
        ),
        compiler_params=pltpu.CompilerParams(
            dimension_semantics=("parallel", "parallel"),
            vmem_limit_bytes=vmem_limit,
        ),
    )(x2d, basis_hi, basis_lo)

    re = out[:M, :F]
    im = out[:M, F:2 * F]
    x_ft = jax.lax.complex(re, im)                # complex64
    return x_ft.reshape(orig_shape[:-1] + (F,))


def _check(x, **kwargs):
    out = jax.block_until_ready(fourier_decomp_rfft(x, **kwargs))
    ref = jnp.fft.rfft(x.astype(jnp.float32), axis=-1)
    # bf16x3 gives ~1e-5 relative accuracy; absolute spectral magnitudes grow
    # with sqrt(N)*||x||, so compare against the spectrum scale.
    scale = float(jnp.max(jnp.abs(ref)))
    np.testing.assert_allclose(np.asarray(out), np.asarray(ref),
                               rtol=1e-4, atol=1e-4 * max(1.0, scale))


if __name__ == "__main__":
    key = jax.random.PRNGKey(0)
    k1, k2, k3 = jax.random.split(key, 3)

    # Canonical small case (rfft along the last axis, as in the module).
    _check(jax.random.normal(k1, (2, 4, 16), dtype=jnp.float32))
    # Non-power-of-two N; M not a multiple of the row tile (row padding path).
    _check(jax.random.normal(k2, (3, 5, 50), dtype=jnp.float32))
    # Force the column-tiled (large-N) regime: 2-D grid, streamed basis tiles.
    _check(jax.random.normal(k3, (130, 200), dtype=jnp.float32), max_tn=128)

    # NOTE: the original PyTorch forward has no return statement (returns
    # None); we return x_ft so the rfft hot path is observable.
    print("KERNEL_OK")
</pallas_src>

<mosaic_0001>
module attributes {stable_mosaic.version = 11 : i64} {
  func.func @_rfft_kernel(%arg0: i32, %arg1: i32, %arg2: memref<128x16xf32, #tpu.memory_space<vmem>>, %arg3: memref<16x128xbf16, #tpu.memory_space<vmem>>, %arg4: memref<16x128xbf16, #tpu.memory_space<vmem>>, %arg5: memref<128x128xf32, #tpu.memory_space<vmem>>) attributes {dimension_semantics = [#tpu.dimension_semantics<parallel>, #tpu.dimension_semantics<parallel>], iteration_bounds = array<i64: 1, 1>, scalar_prefetch = 0 : i64, scratch_operands = 0 : i64, tpu.core_type = #tpu.core_type<tc>, window_params = [{transform_indices = @transform_0, window_bounds = array<i64: 128, 16>}, {pipeline_mode = #tpu.pipeline_mode<synchronous>, transform_indices = @transform_1, window_bounds = array<i64: 16, 128>}, {pipeline_mode = #tpu.pipeline_mode<synchronous>, transform_indices = @transform_2, window_bounds = array<i64: 16, 128>}, {transform_indices = @transform_3, window_bounds = array<i64: 128, 128>}]} {
    %c0 = arith.constant 0 : index
    %c0_0 = arith.constant 0 : index
    %0 = vector.load %arg2[%c0, %c0_0] : memref<128x16xf32, #tpu.memory_space<vmem>>, vector<128x16xf32>
    %1 = arith.truncf %0 : vector<128x16xf32> to vector<128x16xbf16>
    %2 = arith.extf %1 : vector<128x16xbf16> to vector<128x16xf32>
    %3 = arith.subf %0, %2 : vector<128x16xf32>
    %4 = arith.truncf %3 : vector<128x16xf32> to vector<128x16xbf16>
    %c0_1 = arith.constant 0 : index
    %c0_2 = arith.constant 0 : index
    %5 = vector.load %arg3[%c0_1, %c0_2] : memref<16x128xbf16, #tpu.memory_space<vmem>>, vector<16x128xbf16>
    %c0_3 = arith.constant 0 : index
    %c0_4 = arith.constant 0 : index
    %6 = vector.load %arg4[%c0_3, %c0_4] : memref<16x128xbf16, #tpu.memory_space<vmem>>, vector<16x128xbf16>
    %cst = arith.constant dense<0.000000e+00> : vector<128x128xf32>
    %7 = tpu.matmul %1, %5, %cst {dimension_numbers = #tpu.dot_dimension_numbers<[1], [0], [0], [1], [0, 0, 1, 1], [], []>} : vector<128x16xbf16>, vector<16x128xbf16>, vector<128x128xf32> -> vector<128x128xf32>
    %cst_5 = arith.constant dense<0.000000e+00> : vector<128x128xf32>
    %8 = tpu.matmul %4, %5, %cst_5 {dimension_numbers = #tpu.dot_dimension_numbers<[1], [0], [0], [1], [0, 0, 1, 1], [], []>} : vector<128x16xbf16>, vector<16x128xbf16>, vector<128x128xf32> -> vector<128x128xf32>
    %9 = arith.addf %7, %8 : vector<128x128xf32>
    %cst_6 = arith.constant dense<0.000000e+00> : vector<128x128xf32>
    %10 = tpu.matmul %1, %6, %cst_6 {dimension_numbers = #tpu.dot_dimension_numbers<[1], [0], [0], [1], [0, 0, 1, 1], [], []>} : vector<128x16xbf16>, vector<16x128xbf16>, vector<128x128xf32> -> vector<128x128xf32>
    %11 = arith.addf %9, %10 : vector<128x128xf32>
    %c0_7 = arith.constant 0 : index
    %c0_8 = arith.constant 0 : index
    %12 = vector.load %arg5[%c0_7, %c0_8] : memref<128x128xf32, #tpu.memory_space<vmem>>, vector<128x128xf32>
    tpu.vector_store %arg5[%c0_7, %c0_8], %11 {strides = array<i32>} : memref<128x128xf32, #tpu.memory_space<vmem>>, vector<128x128xf32>,
    return
  }
  func.func @transform_0(%arg0: i32, %arg1: i32) -> (i32, i32) {
    %c0_i32 = arith.constant 0 : i32
    %c0_i32_0 = arith.constant 0 : i32
    return %arg1, %c0_i32 : i32, i32
  }
  func.func @transform_1(%arg0: i32, %arg1: i32) -> (i32, i32) {
    %c0_i32 = arith.constant 0 : i32
    %c0_i32_0 = arith.constant 0 : i32
    return %c0_i32, %arg0 : i32, i32
  }
  func.func @transform_2(%arg0: i32, %arg1: i32) -> (i32, i32) {
    %c0_i32 = arith.constant 0 : i32
    %c0_i32_0 = arith.constant 0 : i32
    return %c0_i32, %arg0 : i32, i32
  }
  func.func @transform_3(%arg0: i32, %arg1: i32) -> (i32, i32) {
    %c0_i32 = arith.constant 0 : i32
    return %arg1, %arg0 : i32, i32
  }
}

</mosaic_0001>

<bundles_post_ra>
// kernel: tpu_custom_call.1
= control target key start
LH: loop header
LB: loop body
LE: loop exit
PB: predicated region body
PF: predicated region fallthrough
CT: control target
= control target key end

     0   :  { %vm90_vm0 = vcmask 130048   ;;  %s779_s0 = inlined_call_operand.vmem [shape: f32[128,16], index: 0, kind: input, shape index: {}]   ;;  %s780_s1 = inlined_call_operand.vmem [shape: bf16[16,128], index: 1, kind: input, shape index: {}]   ;;  %s781_s2 = inlined_call_operand.vmem [shape: bf16[16,128], index: 2, kind: input, shape index: {}]   ;;  %s782_s3 = inlined_call_operand.hbm [shape: f32[128,128], index: 3, kind: output, shape index: {}]  }
   0x1   :  { %v628_v0 = vld [vmem:[%s780_s1] sm:$0xff]   ;;  %v17_v2 = vld [vmem:[%s779_s0 + $0x8] sm:$0xff]  ;;  %v18_v3 = vld [vmem:[%s779_s0 + $0x10] sm:$0xff] }
   0x2   :  { %v16_v1 = vld [vmem:[%s779_s0] sm:$0xff]  ;;  %555 = vmatprep.subr.bf16.mxu0 %v628_v0  ;;  %537 = vmatprep.subr.bf16.mxu1 %v628_v0  ;;  %v19_v5 = vld [vmem:[%s779_s0 + $0x18] sm:$0xff]  ;;  %v21_v9 = vld [vmem:[%s779_s0 + $0x28] sm:$0xff] }
   0x3   :  { %v32_v4 = vpack.c.bf16 %v17_v2, %v16_v1  ;;  %556 = vmatpush3.bf16.msra.mxu0 %v628_v0  ;;  %538 = vmatpush3.bf16.msra.mxu1 %v628_v0  ;;  %v692_v6 = vpack.c.bf16 %v19_v5, %v18_v3  ;;  %v629_v7 = vld [vmem:[%s781_s2] sm:$0xff]   ;;  %v22_v13 = vld [vmem:[%s779_s0 + $0x30] sm:$0xff]  ;;  %v23_v14 = vld [vmem:[%s779_s0 + $0x38] sm:$0xff] }
   0x4   :  { %v20_v8 = vld [vmem:[%s779_s0 + $0x20] sm:$0xff]  ;;  %591 = vmatprep.subr.bf16.mxu1 %v628_v0  ;;  %573 = vmatprep.subr.bf16.mxu0 %v629_v7  ;;  %v712_v17 = vpack.c.bf16 %v23_v14, %v22_v13  ;;  %v25_v19 = vld [vmem:[%s779_s0 + $0x48] sm:$0xff] }
   0x5   :  { %557 = vmatprep.mubr.msk.bf16.mxu0 %vm90_vm0, %v32_v4  ;;  %v40_v10 = vunpack.c.l.bf16 %v32_v4  ;;  %v41_v11 = vunpack.c.h.bf16 %v32_v4  ;;  %v34_v12 = vpack.c.bf16 %v21_v9, %v20_v8  ;;  %v42_v15 = vunpack.c.l.bf16 %v692_v6  ;;  %v24_v18 = vld [vmem:[%s779_s0 + $0x40] sm:$0xff] }
   0x6   :  { %v43_v16 = vunpack.c.h.bf16 %v692_v6  ;;  %558 = vmatmul.mubr.msk.bf16.vlgmr.msra.gmra.mrb[0].mxu0 %vm90_vm0, %v692_v6  ;;  %v46_v26 = vunpack.c.l.bf16 %v712_v17  ;;  %v47_v27 = vunpack.c.h.bf16 %v712_v17 }
   0x7   :  { %v56_v20 = vsub.f32 %v16_v1, %v40_v10  ;;  %v57_v21 = vsub.f32 %v17_v2, %v41_v11  ;;  %v44_v22 = vunpack.c.l.bf16 %v34_v12  ;;  %v45_v23 = vunpack.c.h.bf16 %v34_v12  ;;  %574 = vmatpush3.bf16.msra.mxu0 %v629_v7  ;;  %561 = vmatprep.mubr.msk.bf16.mxu0 %vm90_vm0, %v34_v12 }
   0x8   :  { %v58_v24 = vsub.f32 %v18_v3, %v42_v15  ;;  %v59_v25 = vsub.f32 %v19_v5, %v43_v16 }
   0x9   :  { %8 = vsyncpa [#allocation3], 0  ;;  %v72_v28 = vpack.c.bf16 %v57_v21, %v56_v20  ;;  %v60_v29 = vsub.f32 %v20_v8, %v44_v22  ;;  %v61_v30 = vsub.f32 %v21_v9, %v45_v23  ;;  %v36_v31 = vpack.c.bf16 %v25_v19, %v24_v18  ;;  %v26_v32 = vld [vmem:[%s779_s0 + $0x50] sm:$0xff]  ;;  %v27_v33 = vld [vmem:[%s779_s0 + $0x58] sm:$0xff] }
   0xa   :  { %v73_v34 = vpack.c.bf16 %v59_v25, %v58_v24  ;;  %v28_v35 = vld [vmem:[%s779_s0 + $0x60] sm:$0xff]  ;;  %v29_v36 = vld [vmem:[%s779_s0 + $0x68] sm:$0xff]  ;;  %v62_v40 = vsub.f32 %v22_v13, %v46_v26  ;;  %v63_v41 = vsub.f32 %v23_v14, %v47_v27  ;;  %v37_v42 = vpack.c.bf16 %v27_v33, %v26_v32  ;;  %v30_v52 = vld [vmem:[%s779_s0 + $0x70] sm:$0xff] }
   0xb   :  { %539 = vmatprep.mubr.msk.bf16.mxu1 %vm90_vm0, %v72_v28  ;;  %v74_v37 = vpack.c.bf16 %v61_v30, %v60_v29  ;;  %v48_v38 = vunpack.c.l.bf16 %v36_v31  ;;  %v49_v39 = vunpack.c.h.bf16 %v36_v31  ;;  %v38_v45 = vpack.c.bf16 %v29_v36, %v28_v35  ;;  %v31_v53 = vld [vmem:[%s779_s0 + $0x78] sm:$0xff]  ;;  %s654_s0 = smov [#allocation2]  }
   0xc   :  { %540 = vmatmul.mubr.msk.bf16.vlgmr.msra.gmra.mrb[0].mxu1 %vm90_vm0, %v73_v34  ;;  %v75_v46 = vpack.c.bf16 %v63_v41, %v62_v40  ;;  %v50_v47 = vunpack.c.l.bf16 %v37_v42  ;;  %v51_v48 = vunpack.c.h.bf16 %v37_v42  ;;  %v39_v56 = vpack.c.bf16 %v31_v53, %v30_v52  ;;  %s473_s19 = sshll.u32 %s654_s0, 4  ;;  %s474_s19 = int_to_ptr.vmem [resolvable:$true] %s473_s19 }
   0xd   :  { %592 = vmatpush3.bf16.msra.mxu1 %v628_v0  ;;  %543 = vmatprep.mubr.msk.bf16.mxu1 %vm90_vm0, %v74_v37  ;;  %v64_v43 = vsub.f32 %v24_v18, %v48_v38  ;;  %v65_v44 = vsub.f32 %v25_v19, %v49_v39  ;;  %v52_v50 = vunpack.c.l.bf16 %v38_v45  ;;  %v53_v51 = vunpack.c.h.bf16 %v38_v45  ;;  %s630_s20 = scalar_lea.vmem %s474_s19, 2048  ;;  %p635_p1 = scmp.lt.s32.totalorder %s474_s19, %s474_s19 }
   0xe   :  { %562 = vmatmul.mubr.msk.bf16.gmra.mrb[4].mxu0 %vm90_vm0, %v712_v17  ;;  %v66_v54 = vsub.f32 %v26_v32, %v50_v47  ;;  %v67_v55 = vsub.f32 %v27_v33, %v51_v48  ;;  %v54_v60 = vunpack.c.l.bf16 %v39_v56  ;;  %v55_v61 = vunpack.c.h.bf16 %v39_v56  ;;  %p631_p0 = scmp.ne.s32.totalorder %s474_s19, %s630_s20  ;;  %p636_p2 = scmp.lt.s32.totalorder %s630_s20, %s630_s20 }
   0xf   :  { %575 = vmatprep.mubr.msk.bf16.mxu0 %vm90_vm0, %v32_v4  ;;  %v76_v49 = vpack.c.bf16 %v65_v44, %v64_v43  ;;  %v68_v57 = vsub.f32 %v28_v35, %v52_v50  ;;  %v69_v58 = vsub.f32 %v29_v36, %v53_v51 }
  0x10   :  { %v77_v59 = vpack.c.bf16 %v67_v55, %v66_v54  ;;  %v70_v63 = vsub.f32 %v30_v52, %v54_v60  ;;  %v71_v0 = vsub.f32 %v31_v53, %v55_v61  ;;  %p637_p3 = por %p636_p2, %p635_p1 }
  0x11   :  { %v78_v62 = vpack.c.bf16 %v69_v58, %v68_v57 }
  0x12   :  { %v79_v1 = vpack.c.bf16 %v71_v0, %v70_v63  ;;  %p638_p4 = pnand %p637_p3, %p631_p0 }
  0x14   :  { %544 = vmatmul.mubr.msk.bf16.gmra.mrb[4].mxu1 %vm90_vm0, %v75_v46 }
  0x15   :  { %547 = vmatprep.mubr.msk.bf16.mxu1 %vm90_vm0, %v76_v49 }
  0x16   :  { %576 = vmatmul.mubr.msk.bf16.vlgmr.msra.gmra.mrb[0].mxu0 %vm90_vm0, %v692_v6 }
  0x17   :  { %579 = vmatprep.mubr.msk.bf16.mxu0 %vm90_vm0, %v34_v12 }
  0x1c   :  { %548 = vmatmul.mubr.msk.bf16.gmra.mrb[8].mxu1 %vm90_vm0, %v77_v59 }
  0x1d   :  { %551 = vmatprep.mubr.msk.bf16.mxu1 %vm90_vm0, %v78_v62 }
  0x1e   :  { %580 = vmatmul.mubr.msk.bf16.gmra.mrb[4].mxu0 %vm90_vm0, %v712_v17 }
  0x1f   :  { %583 = vmatprep.mubr.msk.bf16.mxu0 %vm90_vm0, %v36_v31 }
  0x24   :  { %552 = vmatmul.mubr.msk.bf16.gmra.mrb[12].mxu1 %vm90_vm0, %v79_v1 }
  0x25   :  { %565 = vmatprep.mubr.msk.bf16.mxu1 %vm90_vm0, %v36_v31 }
  0x26   :  { %584 = vmatmul.mubr.msk.bf16.gmra.mrb[8].mxu0 %vm90_vm0, %v37_v42 }
  0x27   :  { %587 = vmatprep.mubr.msk.bf16.mxu0 %vm90_vm0, %v38_v45 }
  0x2c   :  { %566 = vmatmul.mubr.msk.bf16.vlgmr.msra.gmra.mrb[8].mxu1 %vm90_vm0, %v37_v42 }
  0x2d   :  { %569 = vmatprep.mubr.msk.bf16.mxu1 %vm90_vm0, %v38_v45 }
  0x2e   :  { %588 = vmatmul.mubr.msk.bf16.gmra.mrb[12].mxu0 %vm90_vm0, %v39_v56 }
  0x34   :  { %570 = vmatmul.mubr.msk.bf16.gmra.mrb[12].mxu1 %vm90_vm0, %v39_v56 }
  0xdf   :  { %v541_v2 = vpop.f32.mrb[0].mxu1 }
  0xe0   :  { %v149_v3 = vpop.f32.mrb[1].mxu1 }
  0xe1   :  { %v542_v4 = vpop.f32.mrb[2].mxu1 }
  0xe2   :  { %v152_v5 = vpop.f32.mrb[3].mxu1 }
  0xe7   :  { %v545_v6 = vpop.f32.mrb[4].mxu1 }
  0xe8   :  { %v165_v7 = vpop.f32.mrb[5].mxu1 }
  0xe9   :  { %v546_v8 = vpop.f32.mrb[6].mxu1  ;;  %v577_v10 = vpop.f32.mrb[0].mxu0 }
  0xea   :  { %v168_v9 = vpop.f32.mrb[7].mxu1  ;;  %v593_v11 = vadd.f32 %v577_v10, %v541_v2  ;;  %v373_v12 = vpop.f32.mrb[1].mxu0 }
  0xeb   :  { %v594_v13 = vadd.f32 %v373_v12, %v149_v3  ;;  %v578_v14 = vpop.f32.mrb[2].mxu0 }
  0xec   :  { %454 = vst [vmem:[#allocation2 + $0x10] sm:$0xff] %v593_v11  ;;  %v595_v15 = vadd.f32 %v578_v14, %v542_v4  ;;  %v376_v16 = vpop.f32.mrb[3].mxu0 }
  0xed   :  { %452 = vst [vmem:[#allocation2] sm:$0xff] %v594_v13  ;;  %v596_v17 = vadd.f32 %v376_v16, %v152_v5 }
  0xee   :  { %455 = vst [vmem:[#allocation2 + $0x18] sm:$0xff] %v595_v15 }
  0xef   :  { %453 = vst [vmem:[#allocation2 + $0x8] sm:$0xff] %v596_v17 }
  0xf1   :  { %v581_v18 = vpop.f32.mrb[4].mxu0 }
  0xf2   :  { %v597_v19 = vadd.f32 %v581_v18, %v545_v6  ;;  %v389_v20 = vpop.f32.mrb[5].mxu0 }
  0xf3   :  { %v598_v21 = vadd.f32 %v389_v20, %v165_v7  ;;  %v582_v22 = vpop.f32.mrb[6].mxu0 }
  0xf4   :  { %458 = vst [vmem:[#allocation2 + $0x30] sm:$0xff] %v597_v19  ;;  %v599_v23 = vadd.f32 %v582_v22, %v546_v8  ;;  %v392_v24 = vpop.f32.mrb[7].mxu0 }
  0xf5   :  { %456 = vst [vmem:[#allocation2 + $0x20] sm:$0xff] %v598_v21  ;;  %v600_v25 = vadd.f32 %v392_v24, %v168_v9 }
  0xf6   :  { %459 = vst [vmem:[#allocation2 + $0x38] sm:$0xff] %v599_v23 }
  0xf7   :  { %457 = vst [vmem:[#allocation2 + $0x28] sm:$0xff] %v600_v25 }
  0xf9   :  { %v585_v26 = vpop.f32.mrb[8].mxu0 }
  0xfa   :  { %v405_v27 = vpop.f32.mrb[9].mxu0 }
  0xfb   :  { %v586_v28 = vpop.f32.mrb[10].mxu0 }
  0xfc   :  { %v408_v29 = vpop.f32.mrb[11].mxu0 }
  0xff   :  { %v567_v30 = vpop.f32.mrb[8].mxu1 }
 0x100   :  { %v601_v31 = vadd.f32 %v585_v26, %v567_v30  ;;  %v302_v32 = vpop.f32.mrb[9].mxu1 }
 0x101   :  { %v602_v33 = vadd.f32 %v405_v27, %v302_v32  ;;  %v568_v34 = vpop.f32.mrb[10].mxu1  ;;  %v589_v37 = vpop.f32.mrb[12].mxu0 }
 0x102   :  { %462 = vst [vmem:[#allocation2 + $0x50] sm:$0xff] %v601_v31  ;;  %v603_v35 = vadd.f32 %v586_v28, %v568_v34  ;;  %v305_v36 = vpop.f32.mrb[11].mxu1  ;;  %v421_v39 = vpop.f32.mrb[13].mxu0 }
 0x103   :  { %460 = vst [vmem:[#allocation2 + $0x40] sm:$0xff] %v602_v33  ;;  %v604_v38 = vadd.f32 %v408_v29, %v305_v36  ;;  %v590_v40 = vpop.f32.mrb[14].mxu0 }
 0x104   :  { %463 = vst [vmem:[#allocation2 + $0x58] sm:$0xff] %v603_v35  ;;  %v424_v41 = vpop.f32.mrb[15].mxu0 }
 0x105   :  { %461 = vst [vmem:[#allocation2 + $0x48] sm:$0xff] %v604_v38 }
 0x107   :  { %v571_v42 = vpop.f32.mrb[12].mxu1 }
 0x108   :  { %v605_v43 = vadd.f32 %v589_v37, %v571_v42  ;;  %v318_v44 = vpop.f32.mrb[13].mxu1 }
 0x109   :  { %v606_v45 = vadd.f32 %v421_v39, %v318_v44  ;;  %v572_v46 = vpop.f32.mrb[14].mxu1 }
 0x10a   :  { %466 = vst [vmem:[#allocation2 + $0x70] sm:$0xff] %v605_v43  ;;  %v607_v47 = vadd.f32 %v590_v40, %v572_v46  ;;  %v321_v48 = vpop.f32.mrb[15].mxu1 }
 0x10b   :  { %464 = vst [vmem:[#allocation2 + $0x60] sm:$0xff] %v606_v45  ;;  %v608_v49 = vadd.f32 %v424_v41, %v321_v48 }
 0x10c   :  { %467 = vst [vmem:[#allocation2 + $0x78] sm:$0xff] %v607_v47 }
 0x10d   :  { %465 = vst [vmem:[#allocation2 + $0x68] sm:$0xff] %v608_v49 }
 0x10e   :  { %641 = shalt.err (!%p638_p4)
}
 0x10f   :  { %s642_s22 = scalar_lea.hbm %s782_s3, 2048 }
 0x110   :  { %p643_p5 = scmp.ne.s32.totalorder %s782_s3, %s642_s22  ;;  %p646_p6 = scmp.lt.u32.totalorder %s642_s22, %s782_s3 }
 0x112   :  { %p648_p7 = pnand %p646_p6, %p643_p5 }
 0x114   :  { %651 = shalt.err (!%p648_p7)
}
 0x115   :  { %s655_s27 = smov 128   ;;  %s656_s28 = smov 8  }
 0x116   :  { %479 = dma.vmem_to_hbm [thread:$0]  %s474_s19, 2048, %s782_s3, [#allocation3], %s655_s27, %s655_s27, %s656_s28  }
 0x117   :  { %652 = dma.done.wait [#allocation3], 2048  }
 0x118   :  { %653 = vsyncadd [#allocation3], 4294965248 }
 0x119   :  { %483 = vsyncpa [#allocation3], 1 }

</bundles_post_ra>
